<compile_context>
chip_gen: v6e
topology: v6e:2x2x1
jax: 0.10.0
libtpu: 0.0.40
codegen_flags: <defaults>
</compile_context>

<pallas_src>
import functools

import numpy as np
import jax
import jax.numpy as jnp
from jax.experimental import pallas as pl
from jax.experimental.pallas import tpu as pltpu

LOG_STD_MAX = 2.0
LOG_STD_MIN = -20.0
_HALF_LOG_2PI = 0.5 * float(np.log(2.0 * np.pi))


# -----------------------------------------------------------------------------
# Kernels
# -----------------------------------------------------------------------------
def _trunk_mu(x_ref, w1_ref, b1_ref, w2_ref, b2_ref, w3_ref, b3_ref):
    """Two tanh hidden layers + mu head.

    bf16 operands feed the MXU (native single-pass path); accumulation, bias
    adds and tanh stay in f32.
    """
    x = x_ref[...].astype(jnp.bfloat16)                                   # [TB, D]
    h1 = jnp.tanh(jnp.dot(x, w1_ref[...],
                          preferred_element_type=jnp.float32) + b1_ref[...])
    h2 = jnp.tanh(jnp.dot(h1.astype(jnp.bfloat16), w2_ref[...],
                          preferred_element_type=jnp.float32) + b2_ref[...])
    mu = jnp.dot(h2.astype(jnp.bfloat16), w3_ref[...],
                 preferred_element_type=jnp.float32) + b3_ref[...]        # [TB, A]
    return mu


def _actor_mu_kernel(x_ref, w1_ref, b1_ref, w2_ref, b2_ref, w3_ref, b3_ref,
                     mu_t_ref):
    mu = _trunk_mu(x_ref, w1_ref, b1_ref, w2_ref, b2_ref, w3_ref, b3_ref)
    # Lane-dense store: [A, TB] so the batch sits on the 128-wide lane axis.
    mu_t_ref[...] = mu.T.astype(mu_t_ref.dtype)


def _actor_mu_logp_kernel(x_ref, act_ref, w1_ref, b1_ref, w2_ref, b2_ref,
                          w3_ref, b3_ref, mu_t_ref, logp_t_ref, *,
                          log_std, inv_std):
    mu = _trunk_mu(x_ref, w1_ref, b1_ref, w2_ref, b2_ref, w3_ref, b3_ref)
    mu_t = mu.T                                                           # [A, TB]
    mu_t_ref[...] = mu_t.astype(mu_t_ref.dtype)

    # Diagonal Normal log-prob with scalar std, summed over the action dim.
    # Done in the transposed (lane-dense) layout: the action-dim sum becomes a
    # cheap sublane reduction and both stores are unmasked full-lane vst.
    a_t = act_ref[...].astype(jnp.float32).T                              # [A, TB]
    z = (a_t - mu_t) * inv_std
    lp = -0.5 * z * z - (log_std + _HALF_LOG_2PI)                         # [A, TB]
    logp_t_ref[...] = jnp.sum(lp, axis=0, keepdims=True)                  # [1, TB]


# -----------------------------------------------------------------------------
# Wrapper
# -----------------------------------------------------------------------------
def _choose_batch_tiling(B, tb_req):
    """Pick (num_tiles, tile_rows, padded_rows).

    Multi-tile runs use a 128-aligned tile because the transposed (lane-dense)
    outputs put the batch on the lane axis.  A single tile of the full batch
    needs no alignment.  For B >= 256 at least two grid steps are used so
    v7x's two TensorCores both get work on the "parallel" batch axis.
    """
    if B < 256:
        return 1, B, B
    tb = max(128, min(tb_req, B // 2))
    tb = (tb // 128) * 128
    n = -(-B // tb)
    return n, tb, n * tb


def mlp_gaussian_actor_forward(obs, params, act=None, *, std_value=0.5, tb=512):
    """Returns (mu, std, logp_a); logp_a is None when act is None.

    obs: [B, obs_dim] float32.  act: optional [B, act_dim] float32.
    params: dict of pre-transposed ([in, out]) weights / ([1, out]) biases.
    """
    B, obs_dim = obs.shape
    # Matmul operands are cast to bf16 (weights once here, activations in the
    # kernel); accumulation stays f32.
    w1 = params["w1"].astype(jnp.bfloat16)
    w2 = params["w2"].astype(jnp.bfloat16)
    w_mu = params["w_mu"].astype(jnp.bfloat16)
    b1, b2, b_mu = params["b1"], params["b2"], params["b_mu"]
    h1_dim, h2_dim, act_dim = w1.shape[1], w2.shape[1], w_mu.shape[1]

    # std path for the default std_source=None: pure config constant.
    log_std = float(np.clip(np.log(std_value), LOG_STD_MIN, LOG_STD_MAX))
    std = float(np.exp(log_std))

    n_tiles, tb, b_pad = _choose_batch_tiling(B, tb)
    grid = (n_tiles,)

    def _maybe_pad(x):
        # Only materialized when B is not a multiple of the chosen tile.
        return x if b_pad == B else jnp.pad(x, ((0, b_pad - B), (0, 0)))

    obs_p = _maybe_pad(obs)

    # Weights/biases: constant block index -> DMA'd once, VMEM-resident.
    resident = lambda a: pl.BlockSpec(a.shape, lambda i: (0, 0))
    # Batched operands: stream one (tb, ncol) row tile per grid step.
    row_stream = lambda ncol: pl.BlockSpec((tb, ncol), lambda i: (i, 0))
    # Transposed outputs: one (nrow, tb) lane-dense tile per grid step.
    lane_out = lambda nrow: pl.BlockSpec((nrow, tb), lambda i: (0, i))

    w_args = (w1, b1, w2, b2, w_mu, b_mu)
    w_specs = [resident(a) for a in w_args]

    flops = 2 * b_pad * (obs_dim * h1_dim + h1_dim * h2_dim + h2_dim * act_dim)
    transcendentals = b_pad * (h1_dim + h2_dim)
    param_bytes = int(sum(int(a.size) * a.dtype.itemsize for a in w_args))

    cparams = pltpu.CompilerParams(dimension_semantics=("parallel",))

    if act is None:
        mu_t = pl.pallas_call(
            _actor_mu_kernel,
            out_shape=jax.ShapeDtypeStruct((act_dim, b_pad), jnp.float32),
            grid=grid,
            in_specs=[row_stream(obs_dim)] + w_specs,
            out_specs=lane_out(act_dim),
            compiler_params=cparams,
            cost_estimate=pl.CostEstimate(
                flops=flops,
                transcendentals=transcendentals,
                bytes_accessed=int(obs_p.size) * obs_p.dtype.itemsize
                + param_bytes + b_pad * act_dim * 4),
        )(obs_p, *w_args)
        return mu_t[:, :B].T, jnp.float32(std), None

    act_p = _maybe_pad(act)
    kernel = functools.partial(_actor_mu_logp_kernel,
                               log_std=log_std, inv_std=1.0 / std)
    mu_t, logp_t = pl.pallas_call(
        kernel,
        out_shape=(jax.ShapeDtypeStruct((act_dim, b_pad), jnp.float32),
                   jax.ShapeDtypeStruct((1, b_pad), jnp.float32)),
        grid=grid,
        in_specs=[row_stream(obs_dim), row_stream(act_dim)] + w_specs,
        out_specs=(lane_out(act_dim), lane_out(1)),
        compiler_params=cparams,
        cost_estimate=pl.CostEstimate(
            flops=flops + 6 * b_pad * act_dim,
            transcendentals=transcendentals,
            bytes_accessed=int(obs_p.size) * obs_p.dtype.itemsize
            + int(act_p.size) * act_p.dtype.itemsize
            + param_bytes + b_pad * (act_dim + 1) * 4),
    )(obs_p, act_p, *w_args)

    return mu_t[:, :B].T, jnp.float32(std), logp_t[0, :B]


# -----------------------------------------------------------------------------
# Params / reference
# -----------------------------------------------------------------------------
def init_params(key, obs_dim, hidden_sizes, act_dim, weight_ratio=0.01):
    """PyTorch-Linear-style uniform init; weights stored as [in, out]."""
    h1, h2 = hidden_sizes
    layers = [("1", obs_dim, h1), ("2", h1, h2), ("_mu", h2, act_dim)]
    params = {}
    ks = jax.random.split(key, 2 * len(layers))
    for j, (nm, fin, fout) in enumerate(layers):
        bound = 1.0 / float(np.sqrt(fin))
        w = jax.random.uniform(ks[2 * j], (fin, fout), minval=-bound,
                               maxval=bound, dtype=jnp.float32)
        b = jax.random.uniform(ks[2 * j + 1], (1, fout), minval=-bound,
                               maxval=bound, dtype=jnp.float32)
        if nm == "_mu":
            w = weight_ratio * w            # mu_layer.weight *= weight_ratio
        params[f"w{nm}"] = w
        params[f"b{nm}"] = b
    return params


def reference_forward(obs, params, act=None, std_value=0.5):
    """Pure-JAX reference replicating the kernel's bf16-operand / f32-accumulate
    mixed precision (intentional deviation from PyTorch's all-f32 matmuls)."""
    bf = lambda t: t.astype(jnp.bfloat16)
    h = jnp.tanh(jnp.dot(bf(obs), bf(params["w1"]),
                         preferred_element_type=jnp.float32) + params["b1"])
    h = jnp.tanh(jnp.dot(bf(h), bf(params["w2"]),
                         preferred_element_type=jnp.float32) + params["b2"])
    mu = jnp.dot(bf(h), bf(params["w_mu"]),
                 preferred_element_type=jnp.float32) + params["b_mu"]
    log_std = float(np.clip(np.log(std_value), LOG_STD_MIN, LOG_STD_MAX))
    std = float(np.exp(log_std))
    if act is None:
        return mu, std, None
    z = (act - mu) / std
    logp = jnp.sum(-0.5 * z * z - (log_std + _HALF_LOG_2PI), axis=-1)
    return mu, std, logp


# -----------------------------------------------------------------------------
if __name__ == "__main__":
    key = jax.random.PRNGKey(0)
    k_obs, k_act, k_params = jax.random.split(key, 3)

    B, obs_dim, act_dim = 256, 32, 4
    hidden_sizes = (64, 64)

    obs = jax.random.normal(k_obs, (B, obs_dim), dtype=jnp.float32)
    acts = jax.random.normal(k_act, (B, act_dim), dtype=jnp.float32)
    params = init_params(k_params, obs_dim, hidden_sizes, act_dim)

    # Path 1: actor.forward(obs) -> distribution only (act=None).
    mu, std, logp = mlp_gaussian_actor_forward(obs, params)
    mu = jax.block_until_ready(mu)
    mu_ref, std_ref, _ = reference_forward(obs, params)
    assert mu.shape == (B, act_dim), mu.shape
    assert logp is None
    assert jnp.allclose(mu, mu_ref, atol=2e-3, rtol=2e-3)
    assert np.allclose(float(std), std_ref, atol=1e-6)

    # Path 2: actor.forward(obs, act) -> (pi, logp_a).
    mu2, std2, logp2 = mlp_gaussian_actor_forward(obs, params, act=acts)
    logp2 = jax.block_until_ready(logp2)
    mu_ref2, _, logp_ref2 = reference_forward(obs, params, act=acts)
    assert mu2.shape == (B, act_dim) and logp2.shape == (B,)
    assert jnp.allclose(mu2, mu_ref2, atol=2e-3, rtol=2e-3)
    assert jnp.allclose(logp2, logp_ref2, atol=2e-2, rtol=2e-3)

    print("KERNEL_OK")
</pallas_src>

<mosaic_0001>
module attributes {stable_mosaic.version = 11 : i64} {
  func.func @_actor_mu_kernel(%arg0: i32, %arg1: memref<128x32xf32, #tpu.memory_space<vmem>>, %arg2: memref<32x64xbf16, #tpu.memory_space<vmem>>, %arg3: memref<1x64xf32, #tpu.memory_space<vmem>>, %arg4: memref<64x64xbf16, #tpu.memory_space<vmem>>, %arg5: memref<1x64xf32, #tpu.memory_space<vmem>>, %arg6: memref<64x4xbf16, #tpu.memory_space<vmem>>, %arg7: memref<1x4xf32, #tpu.memory_space<vmem>>, %arg8: memref<4x128xf32, #tpu.memory_space<vmem>>) attributes {dimension_semantics = [#tpu.dimension_semantics<parallel>], iteration_bounds = array<i64: 2>, scalar_prefetch = 0 : i64, scratch_operands = 0 : i64, tpu.core_type = #tpu.core_type<tc>, window_params = [{transform_indices = @transform_0, window_bounds = array<i64: 128, 32>}, {pipeline_mode = #tpu.pipeline_mode<synchronous>, transform_indices = @transform_1, window_bounds = array<i64: 32, 64>}, {pipeline_mode = #tpu.pipeline_mode<synchronous>, transform_indices = @transform_2, window_bounds = array<i64: 1, 64>}, {pipeline_mode = #tpu.pipeline_mode<synchronous>, transform_indices = @transform_3, window_bounds = array<i64: 64, 64>}, {pipeline_mode = #tpu.pipeline_mode<synchronous>, transform_indices = @transform_4, window_bounds = array<i64: 1, 64>}, {pipeline_mode = #tpu.pipeline_mode<synchronous>, transform_indices = @transform_5, window_bounds = array<i64: 64, 4>}, {pipeline_mode = #tpu.pipeline_mode<synchronous>, transform_indices = @transform_6, window_bounds = array<i64: 1, 4>}, {transform_indices = @transform_7, window_bounds = array<i64: 4, 128>}]} {
    %c0 = arith.constant 0 : index
    %c0_0 = arith.constant 0 : index
    %0 = vector.load %arg1[%c0, %c0_0] : memref<128x32xf32, #tpu.memory_space<vmem>>, vector<128x32xf32>
    %1 = arith.truncf %0 : vector<128x32xf32> to vector<128x32xbf16>
    %c0_1 = arith.constant 0 : index
    %c0_2 = arith.constant 0 : index
    %2 = vector.load %arg2[%c0_1, %c0_2] : memref<32x64xbf16, #tpu.memory_space<vmem>>, vector<32x64xbf16>
    %cst = arith.constant dense<0.000000e+00> : vector<128x64xf32>
    %3 = tpu.matmul %1, %2, %cst {dimension_numbers = #tpu.dot_dimension_numbers<[1], [0], [0], [1], [0, 0, 1, 1], [], []>} : vector<128x32xbf16>, vector<32x64xbf16>, vector<128x64xf32> -> vector<128x64xf32>
    %c0_3 = arith.constant 0 : index
    %c0_4 = arith.constant 0 : index
    %4 = vector.load %arg3[%c0_3, %c0_4] : memref<1x64xf32, #tpu.memory_space<vmem>>, vector<1x64xf32>
    %5 = vector.broadcast %4 : vector<1x64xf32> to vector<128x64xf32>
    %6 = arith.addf %3, %5 : vector<128x64xf32>
    %7 = math.tanh %6 : vector<128x64xf32>
    %8 = arith.truncf %7 : vector<128x64xf32> to vector<128x64xbf16>
    %c0_5 = arith.constant 0 : index
    %c0_6 = arith.constant 0 : index
    %9 = vector.load %arg4[%c0_5, %c0_6] : memref<64x64xbf16, #tpu.memory_space<vmem>>, vector<64x64xbf16>
    %cst_7 = arith.constant dense<0.000000e+00> : vector<128x64xf32>
    %10 = tpu.matmul %8, %9, %cst_7 {dimension_numbers = #tpu.dot_dimension_numbers<[1], [0], [0], [1], [0, 0, 1, 1], [], []>} : vector<128x64xbf16>, vector<64x64xbf16>, vector<128x64xf32> -> vector<128x64xf32>
    %c0_8 = arith.constant 0 : index
    %c0_9 = arith.constant 0 : index
    %11 = vector.load %arg5[%c0_8, %c0_9] : memref<1x64xf32, #tpu.memory_space<vmem>>, vector<1x64xf32>
    %12 = vector.broadcast %11 : vector<1x64xf32> to vector<128x64xf32>
    %13 = arith.addf %10, %12 : vector<128x64xf32>
    %14 = math.tanh %13 : vector<128x64xf32>
    %15 = arith.truncf %14 : vector<128x64xf32> to vector<128x64xbf16>
    %c0_10 = arith.constant 0 : index
    %c0_11 = arith.constant 0 : index
    %16 = vector.load %arg6[%c0_10, %c0_11] : memref<64x4xbf16, #tpu.memory_space<vmem>>, vector<64x4xbf16>
    %cst_12 = arith.constant dense<0.000000e+00> : vector<128x4xf32>
    %17 = tpu.matmul %15, %16, %cst_12 {dimension_numbers = #tpu.dot_dimension_numbers<[1], [0], [0], [1], [0, 0, 1, 1], [], []>} : vector<128x64xbf16>, vector<64x4xbf16>, vector<128x4xf32> -> vector<128x4xf32>
    %c0_13 = arith.constant 0 : index
    %c0_14 = arith.constant 0 : index
    %18 = vector.load %arg7[%c0_13, %c0_14] : memref<1x4xf32, #tpu.memory_space<vmem>>, vector<1x4xf32>
    %19 = vector.broadcast %18 : vector<1x4xf32> to vector<128x4xf32>
    %20 = arith.addf %17, %19 : vector<128x4xf32>
    %21 = tpu.transpose %20, [1, 0] : vector<128x4xf32> -> vector<4x128xf32>
    %c0_15 = arith.constant 0 : index
    %c0_16 = arith.constant 0 : index
    %22 = vector.load %arg8[%c0_15, %c0_16] : memref<4x128xf32, #tpu.memory_space<vmem>>, vector<4x128xf32>
    tpu.vector_store %arg8[%c0_15, %c0_16], %21 {strides = array<i32>} : memref<4x128xf32, #tpu.memory_space<vmem>>, vector<4x128xf32>,
    return
  }
  func.func @transform_0(%arg0: i32) -> (i32, i32) {
    %c0_i32 = arith.constant 0 : i32
    %c0_i32_0 = arith.constant 0 : i32
    return %arg0, %c0_i32 : i32, i32
  }
  func.func @transform_1(%arg0: i32) -> (i32, i32) {
    %c0_i32 = arith.constant 0 : i32
    %c0_i32_0 = arith.constant 0 : i32
    %c0_i32_1 = arith.constant 0 : i32
    return %c0_i32, %c0_i32_0 : i32, i32
  }
  func.func @transform_2(%arg0: i32) -> (i32, i32) {
    %c0_i32 = arith.constant 0 : i32
    %c0_i32_0 = arith.constant 0 : i32
    %c0_i32_1 = arith.constant 0 : i32
    return %c0_i32, %c0_i32_0 : i32, i32
  }
  func.func @transform_3(%arg0: i32) -> (i32, i32) {
    %c0_i32 = arith.constant 0 : i32
    %c0_i32_0 = arith.constant 0 : i32
    %c0_i32_1 = arith.constant 0 : i32
    return %c0_i32, %c0_i32_0 : i32, i32
  }
  func.func @transform_4(%arg0: i32) -> (i32, i32) {
    %c0_i32 = arith.constant 0 : i32
    %c0_i32_0 = arith.constant 0 : i32
    %c0_i32_1 = arith.constant 0 : i32
    return %c0_i32, %c0_i32_0 : i32, i32
  }
  func.func @transform_5(%arg0: i32) -> (i32, i32) {
    %c0_i32 = arith.constant 0 : i32
    %c0_i32_0 = arith.constant 0 : i32
    %c0_i32_1 = arith.constant 0 : i32
    return %c0_i32, %c0_i32_0 : i32, i32
  }
  func.func @transform_6(%arg0: i32) -> (i32, i32) {
    %c0_i32 = arith.constant 0 : i32
    %c0_i32_0 = arith.constant 0 : i32
    %c0_i32_1 = arith.constant 0 : i32
    return %c0_i32, %c0_i32_0 : i32, i32
  }
  func.func @transform_7(%arg0: i32) -> (i32, i32) {
    %c0_i32 = arith.constant 0 : i32
    %c0_i32_0 = arith.constant 0 : i32
    return %c0_i32, %arg0 : i32, i32
  }
}

</mosaic_0001>

<bundles_post_ra>
// kernel: tpu_custom_call.1
= control target key start
LH: loop header
LB: loop body
LE: loop exit
PB: predicated region body
PF: predicated region fallthrough
CT: control target
= control target key end

     0   :  { %12 = vsyncpa [#allocation3], 0  ;;  %s1467_s0 = inlined_call_operand.vmem [shape: f32[256,32], index: 0, kind: input, shape index: {}]   ;;  %s1468_s1 = inlined_call_operand.vmem [shape: bf16[32,64], index: 1, kind: input, shape index: {}]   ;;  %s1469_s2 = inlined_call_operand.vmem [shape: f32[1,64], index: 2, kind: input, shape index: {}]   ;;  %s1470_s3 = inlined_call_operand.vmem [shape: bf16[64,64], index: 3, kind: input, shape index: {}]   ;;  %s1471_s4 = inlined_call_operand.vmem [shape: f32[1,64], index: 4, kind: input, shape index: {}]   ;;  %s1472_s5 = inlined_call_operand.vmem [shape: bf16[64,4], index: 5, kind: input, shape index: {}]   ;;  %s1473_s6 = inlined_call_operand.vmem [shape: f32[1,4], index: 6, kind: input, shape index: {}]   ;;  %s1474_s7 = inlined_call_operand.hbm [shape: f32[4,256], index: 7, kind: output, shape index: {}]  }
   0x1   :  { %14 = vsyncpa [#allocation3 + $0x1], 0  ;;  %s1294_s24 = smov 0   ;;  %s1296_s25 = smov 0  }
   0x2   :  { %s1298_s26 = smov 0   ;;  %s1300_s27 = smov 0  }
   0x3 LB: > { %s1315_s28 = sadd.s32 4294967295, %s1251_s27   ;;  %s924_s29 = sadd.s32 4294967294, %s1251_s27   ;;  %s1251_s27 = sphi %s1300_s27, %s1480_s27   ;;  %s1247_s26 = sphi %s1298_s26, %s1479_s26   ;;  %s1243_s25 = sphi %s1296_s25, %s1478_s25   ;;  %s1239_s24 = sphi %s1294_s24, %s1477_s24  }
   0x4   : > { %s1319_s30 = sadd.s32 1, %s1251_s27   ;;  %s179_s8 = sadd.s32 1, %s1247_s26 }
   0x5   : > { %s176_s9 = ssub.s32 %s1251_s27, %s1319_s30  ;;  %p189_p0 = scmp.ne.s32.totalorder %s1247_s26, %s1243_s25 }
   0x6   : > { %p177_p1 = scmp.eq.s32.totalorder %s176_s9, 0  ;;  %p190_p2 = scmp.eq.s32.totalorder %s1315_s28, 1 }
   0x7   : > { %p195_p3 = scmp.ne.s32.totalorder %s1243_s25, %s1239_s24  ;;  %p196_p4 = scmp.eq.s32.totalorder %s924_s29, 1 }
   0x8   : > { %s1330_s10 = scalar_select %p177_p1, %s1247_s26, %s179_s8  }
   0x9   : > { %p1332_p5 = por %p190_p2, %p189_p0  ;;  %p1336_p6 = por %p196_p4, %p195_p3 }
   0xa   : > { %p927_p7 = scmp.ge.s32.totalorder %s1251_s27, 1  ;;  %p241_p8 = scmp.lt.s32.totalorder %s1251_s27, 3 }
   0xc   : > { %p242_p9 = pnand %p927_p7, %p241_p8 }
   0xd   : > { %s929_s15 = sshll.u32 (!%p242_p9), %s1315_s28, 4  ;;  %s270_s16 = sand.u32 (!%p242_p9), 1, %s1243_s25  }
   0xe   : > { %245 = sbr.rel (%p242_p9) target bundleno = 799 (0x31f), region = 48  ;;  %p274_p10 = scmp.lt.s32.totalorder (!%p242_p9), %s929_s15, 31 }
   0xf   : > { %s928_s17 = sshll.u32 (!%p242_p9), %s270_s16, 2  ;;  %s969_s20 = sshll.u32 (!%p242_p9), %s1315_s28, 6 }
  0x10   : > { %s863_s23 = scalar_lea.hbm (!%p242_p9), %s1474_s7, %s969_s20  ;;  %s852_s29 = scalar_lea.sflag (!%p242_p9), [#allocation3], %s270_s16 }
  0x11   : > { %s1253_s9 = smov (!%p242_p9), [#allocation2]  }
  0x12   : > { %s1195_s13 = sshll.u32 (!%p242_p9), %s1253_s9, 4  ;;  %s1196_s13 = int_to_ptr.vmem [resolvable:$false] %s1195_s13 }
  0x13   : > { %v1117_v0 = vld [vmem:[%s1468_s1 + $0x8] sm:$0xff]   ;;  %v1118_v1 = vld [vmem:[%s1468_s1] sm:$0xff]   ;;  %s1482_s15 = smov (!%p274_p10, %s929_s15), 31  ;;  %vm327_vm0 = vcmask 261120   ;;  %v1119_v26 = vld [vmem:[%s1470_s3 + $0x18] sm:$0xff]   ;;  %vm512_vm1 = vcmask 523264  }
  0x14   : > { %1006 = vmatprep.subr.bf16.mxu0 %v1117_v0  ;;  %1074 = vmatprep.subr.bf16.mxu1 %v1117_v0  ;;  %s930_s18 = sshll.u32 %s1482_s15, 3  ;;  %v1120_v27 = vld [vmem:[%s1470_s3 + $0x10] sm:$0xff]   ;;  %v1121_v28 = vld [vmem:[%s1470_s3 + $0x8] sm:$0xff]   ;;  %v1122_v29 = vld [vmem:[%s1470_s3] sm:$0xff]   ;;  %s1197_s28 = scalar_lea.vmem %s1196_s13, 128 }
  0x15   : > { %1007 = vmatpush3.bf16.msra.mxu0 %v1117_v0  ;;  %1076 = vmatpush3.bf16.msra.mxu1 %v1117_v0  ;;  %s1352_s21 = scalar_lea.vmem %s1467_s0, %s930_s18  ;;  %v931_v31 = vld [vmem:[%s1469_s2] ss:$0 sm:$0xff]  ;;  %s272_s18 = scalar_lea.vmem [#allocation2], %s928_s17 }
  0x16   : > { %1008 = vmatprep.subr.bf16.mxu0 %v1118_v1  ;;  %1075 = vmatprep.subr.bf16.mxu1 %v1118_v1  ;;  %v280_v2 = vld [vmem:[%s1352_s21] sm:$0xff]  ;;  %v281_v3 = vld [vmem:[%s1352_s21 + $0x8] sm:$0xff]  ;;  %v282_v4 = vld [vmem:[%s1352_s21 + $0x10] sm:$0xff]  ;;  %s865_s19 = sshll.u32 %s272_s18, 4  ;;  %s1429_s19 = int_to_ptr.vmem [resolvable:$true] %s865_s19 }
  0x17   : > { %v296_v5 = vpack.c.bf16 %v281_v3, %v280_v2  ;;  %v283_v6 = vld [vmem:[%s1352_s21 + $0x18] sm:$0xff]  ;;  %v284_v7 = vld [vmem:[%s1352_s21 + $0x20] sm:$0xff]  ;;  %v285_v8 = vld [vmem:[%s1352_s21 + $0x28] sm:$0xff]  ;;  %s1191_s8 = scalar_lea.vmem %s1429_s19, 64  ;;  %p1198_p0 = scmp.lt.s32.totalorder %s1429_s19, %s1196_s13 }
  0x18   : > { %v297_v9 = vpack.c.bf16 %v283_v6, %v282_v4  ;;  %v298_v10 = vpack.c.bf16 %v285_v8, %v284_v7  ;;  %v288_v11 = vld [vmem:[%s1352_s21 + $0x40] sm:$0xff]  ;;  %v289_v12 = vld [vmem:[%s1352_s21 + $0x48] sm:$0xff]  ;;  %v290_v13 = vld [vmem:[%s1352_s21 + $0x50] sm:$0xff]  ;;  %p1192_p11 = scmp.ne.s32.totalorder %s1429_s19, %s1191_s8  ;;  %p1199_p1 = scmp.lt.s32.totalorder %s1197_s28, %s1191_s8 }
  0x19   : > { %1009 = vmatpush3.bf16.msra.mxu0 %v1118_v1  ;;  %1077 = vmatpush3.bf16.msra.mxu1 %v1118_v1  ;;  %v291_v14 = vld [vmem:[%s1352_s21 + $0x58] sm:$0xff]  ;;  %v286_v15 = vld [vmem:[%s1352_s21 + $0x30] sm:$0xff]  ;;  %v300_v16 = vpack.c.bf16 %v289_v12, %v288_v11  ;;  %v292_v18 = vld [vmem:[%s1352_s21 + $0x60] sm:$0xff] }
  0x1a   : > { %1010 = vmatprep.mubr.msk.bf16.mxu0 %vm327_vm0, %v296_v5  ;;  %v301_v17 = vpack.c.bf16 %v291_v14, %v290_v13  ;;  %v293_v19 = vld [vmem:[%s1352_s21 + $0x68] sm:$0xff]  ;;  %v287_v20 = vld [vmem:[%s1352_s21 + $0x38] sm:$0xff]  ;;  %v294_v23 = vld [vmem:[%s1352_s21 + $0x70] sm:$0xff]  ;;  %1026 = vmatprep.subr.bf16.mxu1 %v1119_v26  ;;  %p1193_p12 = pnand %p1192_p11, %p1332_p5  ;;  %p1200_p2 = por %p1199_p1, %p1198_p0 }
  0x1b   : > { %v302_v21 = vpack.c.bf16 %v293_v19, %v292_v18  ;;  %1018 = vmatprep.mubr.msk.bf16.mxu1 %vm327_vm0, %v300_v16  ;;  %v299_v22 = vpack.c.bf16 %v287_v20, %v286_v15  ;;  %v295_v24 = vld [vmem:[%s1352_s21 + $0x78] sm:$0xff] }
  0x1c   : > { %1011 = vmatmul.mubr.msk.bf16.vlgmr.msra.gmra.mxu0 %vm327_vm0, %v297_v9  ;;  %1019 = vmatmul.mubr.msk.bf16.vlgmr.msra.gmra.mxu1 %vm327_vm0, %v301_v17  ;;  %v303_v25 = vpack.c.bf16 %v295_v24, %v294_v23  ;;  %v1123_v23 = vld [vmem:[%s1472_s5 + $0x18] sm:$0xff]   ;;  %v1124_v24 = vld [vmem:[%s1472_s5 + $0x10] sm:$0xff]   ;;  %p1194_p13 = pneg %p1193_p12 }
  0x1d   : > { %1014 = vmatprep.mubr.msk.bf16.mxu0 %vm327_vm0, %v298_v10  ;;  %1022 = vmatprep.mubr.msk.bf16.mxu1 %vm327_vm0, %v302_v21 }
  0x1e   : > { %1027 = vmatpush3.bf16.msra.mxu1 %v1119_v26  ;;  %1050 = vmatprep.subr.bf16.mxu0 %v1123_v23  ;;  %v1126_v26 = vld [vmem:[%s1472_s5] sm:$0xff]   ;;  %p1201_p3 = pnand %p1200_p2, %p1194_p13 }
  0x1f   : > { %1028 = vmatprep.subr.bf16.mxu1 %v1120_v27  ;;  %1051 = vmatpush3.bf16.msra.mxu0 %v1123_v23 }
  0x20   : > { %1052 = vmatprep.subr.bf16.mxu0 %v1124_v24 }
  0x22   : > { %1029 = vmatpush3.bf16.msra.mxu1 %v1120_v27 }
  0x23   : > { %1030 = vmatprep.subr.bf16.mxu1 %v1121_v28  ;;  %1053 = vmatpush3.bf16.msra.mxu0 %v1124_v24 }
  0x24   : > { %1015 = vmatmul.mubr.msk.bf16.gmra.mxu0 %vm327_vm0, %v299_v22  ;;  %1023 = vmatmul.mubr.msk.bf16.gmra.mxu1 %vm327_vm0, %v303_v25  ;;  %v1125_v25 = vld [vmem:[%s1472_s5 + $0x8] sm:$0xff]  }
  0x25   : > { %1054 = vmatprep.subr.bf16.mxu0 %v1125_v25 }
  0x26   : > { %1031 = vmatpush3.bf16.msra.mxu1 %v1121_v28  ;;  %v942_v28 = vld [vmem:[%s1471_s4] ss:$0 sm:$0xff] }
  0x27   : > { %1032 = vmatprep.subr.bf16.mxu1 %v1122_v29  ;;  %1055 = vmatpush3.bf16.msra.mxu0 %v1125_v25 }
  0x28   : > { %1056 = vmatprep.subr.bf16.mxu0 %v1126_v26 }
  0x2a   : > { %1033 = vmatpush3.bf16.msra.mxu1 %v1122_v29 }
  0x2b   : > { %1057 = vmatpush3.bf16.msra.mxu0 %v1126_v26 }
  0xdc   : > { %v1012_v30 = vpop.f32.mrf.mxu0  ;;  %v1020_v34 = vpop.f32.mrf.mxu1 }
  0xdd   : > { %v395_v38 = vadd.f32 %v1012_v30, %v931_v31  ;;  %v427_v56 = vadd.f32 %v1020_v34, %v931_v31 }
  0xde   : > { %v386_v32 = vpop.f32.mrf.mxu0  ;;  %v418_v37 = vpop.f32.mrf.mxu1 }
  0xdf   : > { %v387_v33 = vadd.f32 %v931_v31, %v386_v32  ;;  %v419_v41 = vadd.f32 %v931_v31, %v418_v37 }
  0xe0   : > { %v1013_v35 = vpop.f32.mrf.mxu0  ;;  %v1021_v42 = vpop.f32.mrf.mxu1 }
  0xe1   : > { %v398_v36 = vadd.f32 %v1013_v35, %v931_v31  ;;  %1127 = vtanh.f32 %v387_v33  ;;  %v430_v57 = vadd.f32 %v1021_v42, %v931_v31 }
  0xe2   : > { %v389_v39 = vpop.f32.mrf.mxu0  ;;  %v421_v45 = vpop.f32.mrf.mxu1 }
  0xe3   : > { %v390_v40 = vadd.f32 %v931_v31, %v389_v39  ;;  %1129 = vtanh.f32 %v398_v36  ;;  %v422_v47 = vadd.f32 %v931_v31, %v421_v45 }
  0xe4   : > { %v1016_v43 = vpop.f32.mrf.mxu0  ;;  %v1024_v49 = vpop.f32.mrf.mxu1 }
  0xe5   : > { %1131 = vtanh.f32 %v390_v40  ;;  %v411_v44 = vadd.f32 %v1016_v43, %v931_v31  ;;  %v443_v5 = vadd.f32 %v1024_v49, %v931_v31 }
  0xe6   : > { %1133 = vtanh.f32 %v395_v38  ;;  %v402_v46 = vpop.f32.mrf.mxu0  ;;  %v434_v52 = vpop.f32.mrf.mxu1 }
  0xe7   : > { %v403_v48 = vadd.f32 %v931_v31, %v402_v46  ;;  %1135 = vtanh.f32 %v419_v41  ;;  %v435_v59 = vadd.f32 %v931_v31, %v434_v52 }
  0xe8   : > { %1137 = vtanh.f32 %v411_v44  ;;  %v1017_v50 = vpop.f32.mrf.mxu0  ;;  %v1025_v55 = vpop.f32.mrf.mxu1 }
  0xe9   : > { %v414_v51 = vadd.f32 %v1017_v50, %v931_v31  ;;  %1139 = vtanh.f32 %v422_v47  ;;  %v446_v7 = vadd.f32 %v1025_v55, %v931_v31 }
  0xea   : > { %1141 = vtanh.f32 %v403_v48  ;;  %v405_v53 = vpop.f32.mrf.mxu0  ;;  %v437_v58 = vpop.f32.mrf.mxu1 }
  0xeb   : > { %1143 = vtanh.f32 %v414_v51  ;;  %v406_v54 = vadd.f32 %v931_v31, %v405_v53  ;;  %v438_v60 = vadd.f32 %v931_v31, %v437_v58 }
  0xed   : > { %1145 = vtanh.f32 %v406_v54 }
  0xee   : > { %v1128_v61 = vpop.eup %1127  ;;  %1147 = vtanh.f32 %v427_v56 }
  0xef   : > { %1149 = vtanh.f32 %v430_v57 }
  0xf0   : > { %v1130_v62 = vpop.eup %1129  ;;  %1151 = vtanh.f32 %v435_v59 }
  0xf1   : > { %1153 = vtanh.f32 %v438_v60 }
  0xf2   : > { %v1132_v63 = vpop.eup %1131  ;;  %1155 = vtanh.f32 %v443_v5 }
  0xf3   : > { %v1134_v0 = vpop.eup %1133  ;;  %v465_v1 = vpack.c.bf16 %v1132_v63, %v1128_v61  ;;  %1157 = vtanh.f32 %v446_v7 }
  0xf4   : > { %v1136_v2 = vpop.eup %1135  ;;  %v466_v3 = vpack.c.bf16 %v1130_v62, %v1134_v0 }
  0xf5   : > { %v1138_v4 = vpop.eup %1137  ;;  %1034 = vmatprep.mubr.msk.bf16.mxu1 %vm512_vm1, %v465_v1 }
  0xf6   : > { %v1140_v6 = vpop.eup %1139  ;;  %1035 = vmatmul.mubr.msk.bf16.vlgmr.msra.gmra.mxu1 %vm512_vm1, %v466_v3 }
  0xf7   : > { %v1142_v8 = vpop.eup %1141  ;;  %v469_v13 = vpack.c.bf16 %v1140_v6, %v1136_v2 }
  0xf8   : > { %v1144_v9 = vpop.eup %1143 }
  0xf9   : > { %v468_v11 = vpack.c.bf16 %v1144_v9, %v1138_v4 }
  0xfa   : > { %v1146_v10 = vpop.eup %1145 }
  0xfb   : > { %v467_v12 = vpack.c.bf16 %v1146_v10, %v1142_v8  ;;  %v1148_v14 = vpop.eup %1147 }
  0xfc   : > { %v1150_v15 = vpop.eup %1149 }
  0xfd   : > { %1038 = vmatprep.mubr.msk.bf16.mxu1 %vm512_vm1, %v467_v12  ;;  %v1152_v16 = vpop.eup %1151  ;;  %v470_v18 = vpack.c.bf16 %v1150_v15, %v1148_v14 }
  0xfe   : > { %1039 = vmatmul.mubr.msk.bf16.gmra.mxu1 %vm512_vm1, %v468_v11  ;;  %v1154_v17 = vpop.eup %1153 }
  0xff   : > { %1042 = vmatprep.mubr.msk.bf16.mxu1 %vm512_vm1, %v469_v13  ;;  %v471_v19 = vpack.c.bf16 %v1154_v17, %v1152_v16  ;;  %v1156_v20 = vpop.eup %1155 }
 0x100   : > { %v1158_v21 = vpop.eup %1157 }
 0x101   : > { %v472_v22 = vpack.c.bf16 %v1158_v21, %v1156_v20  ;;  %v955_v21 = vld [vmem:[%s1473_s6] ss:$0 sm:$0xff] }
 0x106   : > { %1043 = vmatmul.mubr.msk.bf16.gmra.mxu1 %vm512_vm1, %v470_v18 }
 0x107   : > { %1046 = vmatprep.mubr.msk.bf16.mxu1 %vm512_vm1, %v471_v19 }
 0x10e   : > { %1047 = vmatmul.mubr.msk.bf16.gmra.mxu1 %vm512_vm1, %v472_v22 }
 0x1b6   : > { %v1036_v27 = vpop.f32.mrf.mxu1 }
 0x1b7   : > { %v580_v33 = vadd.f32 %v1036_v27, %v942_v28 }
 0x1b8   : > { %v571_v29 = vpop.f32.mrf.mxu1 }
 0x1b9   : > { %v572_v30 = vadd.f32 %v942_v28, %v571_v29 }
 0x1ba   : > { %v1037_v31 = vpop.f32.mrf.mxu1 }
 0x1bb   : > { %v583_v32 = vadd.f32 %v1037_v31, %v942_v28  ;;  %1159 = vtanh.f32 %v572_v30 }
 0x1bc   : > { %v574_v34 = vpop.f32.mrf.mxu1 }
 0x1bd   : > { %v575_v35 = vadd.f32 %v942_v28, %v574_v34  ;;  %1161 = vtanh.f32 %v583_v32 }
 0x1be   : > { %v1040_v36 = vpop.f32.mrf.mxu1 }
 0x1bf   : > { %1163 = vtanh.f32 %v575_v35  ;;  %v596_v41 = vadd.f32 %v1040_v36, %v942_v28 }
 0x1c0   : > { %1165 = vtanh.f32 %v580_v33  ;;  %v587_v37 = vpop.f32.mrf.mxu1 }
 0x1c1   : > { %v588_v38 = vadd.f32 %v942_v28, %v587_v37 }
 0x1c2   : > { %v1041_v39 = vpop.f32.mrf.mxu1 }
 0x1c3   : > { %v599_v40 = vadd.f32 %v1041_v39, %v942_v28  ;;  %1167 = vtanh.f32 %v588_v38 }
 0x1c4   : > { %v590_v42 = vpop.f32.mrf.mxu1 }
 0x1c5   : > { %v591_v43 = vadd.f32 %v942_v28, %v590_v42  ;;  %1169 = vtanh.f32 %v599_v40 }
 0x1c6   : > { %v1044_v44 = vpop.f32.mrf.mxu1 }
 0x1c7   : > { %1171 = vtanh.f32 %v591_v43  ;;  %v612_v45 = vadd.f32 %v1044_v44, %v942_v28 }
 0x1c8   : > { %1173 = vtanh.f32 %v596_v41  ;;  %v603_v46 = vpop.f32.mrf.mxu1  ;;  %v1160_v48 = vpop.eup %1159 }
 0x1c9   : > { %v604_v47 = vadd.f32 %v942_v28, %v603_v46  ;;  %1175 = vtanh.f32 %v612_v45 }
 0x1ca   : > { %v1045_v49 = vpop.f32.mrf.mxu1  ;;  %v1162_v50 = vpop.eup %1161 }
 0x1cb   : > { %v615_v51 = vadd.f32 %v1045_v49, %v942_v28  ;;  %1177 = vtanh.f32 %v604_v47 }
 0x1cc   : > { %v1164_v52 = vpop.eup %1163  ;;  %v606_v53 = vpop.f32.mrf.mxu1 }
 0x1cd   : > { %v1166_v54 = vpop.eup %1165  ;;  %1179 = vtanh.f32 %v615_v51  ;;  %v607_v55 = vadd.f32 %v942_v28, %v606_v53  ;;  %v650_v56 = vpack.c.bf16 %v1164_v52, %v1160_v48 }
 0x1ce   : > { %v651_v57 = vpack.c.bf16 %v1162_v50, %v1166_v54  ;;  %v1048_v58 = vpop.f32.mrf.mxu1 }
 0x1cf   : > { %1181 = vtanh.f32 %v607_v55  ;;  %1058 = vmatprep.mubr.msk.bf16.mxu0 %vm512_vm1, %v650_v56  ;;  %v628_v59 = vadd.f32 %v1048_v58, %v942_v28 }
 0x1d0   : > { %1059 = vmatmul.mubr.msk.bf16.vlgmr.msra.gmra.mxu0 %vm512_vm1, %v651_v57  ;;  %v619_v60 = vpop.f32.mrf.mxu1  ;;  %v1168_v62 = vpop.eup %1167 }
 0x1d1   : > { %v620_v61 = vadd.f32 %v942_v28, %v619_v60  ;;  %1183 = vtanh.f32 %v628_v59 }
 0x1d2   : > { %v1049_v63 = vpop.f32.mrf.mxu1  ;;  %v1170_v0 = vpop.eup %1169 }
 0x1d3   : > { %v631_v1 = vadd.f32 %v1049_v63, %v942_v28  ;;  %1185 = vtanh.f32 %v620_v61 }
 0x1d4   : > { %v1172_v2 = vpop.eup %1171  ;;  %v622_v3 = vpop.f32.mrf.mxu1 }
 0x1d5   : > { %v1174_v4 = vpop.eup %1173  ;;  %1187 = vtanh.f32 %v631_v1  ;;  %v652_v5 = vpack.c.bf16 %v1172_v2, %v1168_v62  ;;  %v623_v6 = vadd.f32 %v942_v28, %v622_v3 }
 0x1d6   : > { %v653_v7 = vpack.c.bf16 %v1170_v0, %v1174_v4  ;;  %v1176_v8 = vpop.eup %1175 }
 0x1d7   : > { %1062 = vmatprep.mubr.msk.bf16.mxu0 %vm512_vm1, %v652_v5  ;;  %1189 = vtanh.f32 %v623_v6 }
 0x1d8   : > { %1063 = vmatmul.mubr.msk.bf16.gmra.mxu0 %vm512_vm1, %v653_v7  ;;  %v1178_v9 = vpop.eup %1177 }
 0x1da   : > { %v1180_v10 = vpop.eup %1179 }
 0x1db   : > { %v655_v12 = vpack.c.bf16 %v1180_v10, %v1176_v8 }
 0x1dc   : > { %v1182_v11 = vpop.eup %1181 }
 0x1dd   : > { %v654_v13 = vpack.c.bf16 %v1182_v11, %v1178_v9 }
 0x1de   : > { %v1184_v14 = vpop.eup %1183 }
 0x1df   : > { %1066 = vmatprep.mubr.msk.bf16.mxu0 %vm512_vm1, %v654_v13 }
 0x1e0   : > { %1067 = vmatmul.mubr.msk.bf16.gmra.mxu0 %vm512_vm1, %v655_v12  ;;  %v1186_v15 = vpop.eup %1185 }
 0x1e2   : > { %v1188_v16 = vpop.eup %1187 }
 0x1e3   : > { %v657_v18 = vpack.c.bf16 %v1188_v16, %v1184_v14 }
 0x1e4   : > { %v1190_v17 = vpop.eup %1189 }
 0x1e5   : > { %v656_v19 = vpack.c.bf16 %v1190_v17, %v1186_v15 }
 0x1e7   : > { %1070 = vmatprep.mubr.msk.bf16.mxu0 %vm512_vm1, %v656_v19 }
 0x1e8   : > { %1071 = vmatmul.mubr.msk.bf16.gmra.mxu0 %vm512_vm1, %v657_v18 }
 0x290   : > { %v1060_v20 = vpop.f32.mrf.mxu0 }
 0x291   : > { %v764_v28 = vadd.f32 %v1060_v20, %v955_v21 }
 0x292   : > { %v755_v22 = vpop.f32.mrf.mxu0 }
 0x293   : > { %v756_v23 = vadd.f32 %v955_v21, %v755_v22 }
 0x294   : > { %v1061_v24 = vpop.f32.mrf.mxu0 }
 0x295   : > { %818 = vxpose.xlu0.b32.start [1/16] (narrow) %v756_v23, 8  ;;  %v767_v30 = vadd.f32 %v1061_v24, %v955_v21 }
 0x296   : > { %v758_v25 = vpop.f32.mrf.mxu0 }
 0x297   : > { %v759_v26 = vadd.f32 %v955_v21, %v758_v25 }
 0x298   : > { %v1064_v27 = vpop.f32.mrf.mxu0 }
 0x299   : > { %819 = vxpose.xlu0.b32.cont [2/16] (narrow) %v759_v26, 8  ;;  %v780_v36 = vadd.f32 %v1064_v27, %v955_v21 }
 0x29a   : > { %v771_v29 = vpop.f32.mrf.mxu0 }
 0x29b   : > { %v772_v32 = vadd.f32 %v955_v21, %v771_v29 }
 0x29c   : > { %v1065_v31 = vpop.f32.mrf.mxu0 }
 0x29d   : > { %820 = vxpose.xlu0.b32.cont [3/16] (narrow) %v764_v28, 8  ;;  %v783_v38 = vadd.f32 %v1065_v31, %v955_v21 }
 0x29e   : > { %v774_v33 = vpop.f32.mrf.mxu0 }
 0x29f   : > { %v775_v34 = vadd.f32 %v955_v21, %v774_v33 }
 0x2a0   : > { %v1068_v35 = vpop.f32.mrf.mxu0 }
 0x2a1   : > { %821 = vxpose.xlu0.b32.cont [4/16] (narrow) %v767_v30, 8  ;;  %v796_v44 = vadd.f32 %v1068_v35, %v955_v21 }
 0x2a2   : > { %v787_v37 = vpop.f32.mrf.mxu0 }
 0x2a3   : > { %v788_v40 = vadd.f32 %v955_v21, %v787_v37 }
 0x2a4   : > { %v1069_v39 = vpop.f32.mrf.mxu0 }
 0x2a5   : > { %822 = vxpose.xlu0.b32.cont [5/16] (narrow) %v772_v32, 8  ;;  %v799_v46 = vadd.f32 %v1069_v39, %v955_v21 }
 0x2a6   : > { %v790_v41 = vpop.f32.mrf.mxu0 }
 0x2a7   : > { %v791_v42 = vadd.f32 %v955_v21, %v790_v41 }
 0x2a8   : > { %v1072_v43 = vpop.f32.mrf.mxu0 }
 0x2a9   : > { %823 = vxpose.xlu0.b32.cont [6/16] (narrow) %v775_v34, 8  ;;  %v812_v51 = vadd.f32 %v1072_v43, %v955_v21 }
 0x2aa   : > { %v803_v45 = vpop.f32.mrf.mxu0 }
 0x2ab   : > { %v804_v48 = vadd.f32 %v955_v21, %v803_v45 }
 0x2ac   : > { %v1073_v47 = vpop.f32.mrf.mxu0 }
 0x2ad   : > { %824 = vxpose.xlu0.b32.cont [7/16] (narrow) %v780_v36, 8  ;;  %v815_v52 = vadd.f32 %v1073_v47, %v955_v21 }
 0x2ae   : > { %v806_v49 = vpop.f32.mrf.mxu0 }
 0x2af   : > { %v807_v50 = vadd.f32 %v955_v21, %v806_v49 }
 0x2b1   : > { %825 = vxpose.xlu0.b32.cont [8/16] (narrow) %v783_v38, 8 }
 0x2b5   : > { %826 = vxpose.xlu0.b32.cont [9/16] (narrow) %v788_v40, 8 }
 0x2b9   : > { %827 = vxpose.xlu0.b32.cont [10/16] (narrow) %v791_v42, 8 }
 0x2bd   : > { %828 = vxpose.xlu0.b32.cont [11/16] (narrow) %v796_v44, 8 }
 0x2c1   : > { %829 = vxpose.xlu0.b32.cont [12/16] (narrow) %v799_v46, 8 }
 0x2c5   : > { %830 = vxpose.xlu0.b32.cont [13/16] (narrow) %v804_v48, 8 }
 0x2c9   : > { %831 = vxpose.xlu0.b32.cont [14/16] (narrow) %v807_v50, 8 }
 0x2cd   : > { %832 = vxpose.xlu0.b32.cont [15/16] (narrow) %v812_v51, 8 }
 0x2d1   : > { %833 = vxpose.xlu0.b32.end [16/16] (narrow) %v815_v52, 8 }
 0x311   : > { %v834_v53 = vpop.trf.xlu0 }
 0x312   : > { %850 = vst [vmem:[%s272_s18] sm:$0xf] %v834_v53 }
 0x313   : > { %1204 = shalt.err (!%p1201_p3)
}
 0x314   : > { %s1205_s14 = scalar_lea.hbm %s863_s23, 64  ;;  %s1209_s17 = scalar_lea.hbm %s1474_s7, 128 }
 0x315   : > { %p1206_p4 = scmp.ne.s32.totalorder %s863_s23, %s1205_s14  ;;  %p1210_p9 = scmp.lt.s32.totalorder %s863_s23, %s1474_s7 }
 0x316   : > { %p1211_p10 = scmp.lt.s32.totalorder %s1209_s17, %s1205_s14 }
 0x317   : > { %p1207_p7 = pnand %p1206_p4, %p1332_p5 }
 0x318   : > { %p1212_p11 = por %p1211_p10, %p1210_p9 }
 0x319   : > { %p1208_p8 = pneg %p1207_p7 }
 0x31b   : > { %p1213_p12 = pnand %p1212_p11, %p1208_p8 }
 0x31d   : > { %1216 = shalt.err (!%p1213_p12)
}
 0x31e   : > { %1078 = dma.vmem_to_hbm [thread:$0]  (%p1332_p5), %s1429_s19, 64, %s863_s23, %s852_s29  }
 0x31f PF: > { %p1084_p13 = scmp.ge.s32.totalorder %s1251_s27, 2  ;;  %s877_s21 = sand.u32 1, %s1239_s24  }
 0x320   : > { %s878_s22 = scalar_lea.sflag [#allocation3], %s877_s21 }
 0x321   : > { %p1081_p0 = pnand %p1084_p13, %p1336_p6 }
 0x323   : > { %p1082_p1 = pneg %p1081_p0 }
 0x325   : > { %1234 = dma.done.wait (%p1082_p1), %s878_s22, 64  }
 0x326   : > { %1236 = vsyncadd (%p1082_p1), %s878_s22, 4294967232  ;;  %p17_p2 = scmp.ge.s32.totalorder %s1319_s30, 4   ;;  %s1477_s24 = smov %s1243_s25 }
 0x327   : > { %s1478_s25 = smov %s1247_s26  ;;  %s1479_s26 = smov %s1330_s10 }
 0x328   : > { %s1480_s27 = smov %s1319_s30  ;;  %19 = sbr.rel (!%p17_p2) target bundleno = 3 (0x3), region = 83 }
 0x32d   :  { %883 = vsyncpa [#allocation3], 1 }
 0x32e   :  { %885 = vsyncpa [#allocation3 + $0x1], 1 }

</bundles_post_ra>
